<compile_context>
chip_gen: v7x
topology: tpu7x:2x2x1
jax: 0.10.0
libtpu: 0.0.40
codegen_flags: <defaults>
</compile_context>

<pallas_src>
import functools

import jax
import jax.numpy as jnp
import numpy as np
from jax import lax
from jax.experimental import pallas as pl
from jax.experimental.pallas import tpu as pltpu


# --------------------------------------------------------------------------- #
# Host-side constants
# --------------------------------------------------------------------------- #
def _tap_masks(H, W):
    """0/1 mask per 3x3 tap over the flat H*W pixel index (zero where the tap reads the halo)."""
    m = np.zeros((9, H * W), np.float32)
    for t in range(9):
        dy, dx = t // 3, t % 3
        for h in range(H):
            for w in range(W):
                if 0 <= h + dy - 1 < H and 0 <= w + dx - 1 < W:
                    m[t, h * W + w] = 1.0
    return m


def _const_spec(shape):
    nd = len(shape)
    return pl.BlockSpec(shape, lambda i, _nd=nd: (0,) * _nd)


# --------------------------------------------------------------------------- #
# Fused kernel: exp_conv(3x3)+BN+ReLU6 -> SE -> pw_conv(1x1)+BN+ReLU6 -> +shortcut
# Working layout: channels in sublanes, pixels in lanes  (C, nb*H*W).
# --------------------------------------------------------------------------- #
def _fuse_mbneck_kernel(x_ref, mask_ref, *refs, H, W, cin, cmid, cout, nb, has_sc):
    if has_sc:
        (w_exp_ref, b_exp_ref, w_sed_ref, b_sed_ref, w_seu_ref, b_seu_ref,
         w_pw_ref, b_pw_ref, w_sc_ref, o_ref) = refs
    else:
        (w_exp_ref, b_exp_ref, w_sed_ref, b_sed_ref, w_seu_ref, b_seu_ref,
         w_pw_ref, b_pw_ref, o_ref) = refs

    hw = H * W
    x = x_ref[...]                       # (nb, Cin, HW)  lane dim = HW (>=128): lane-dense
    masks = mask_ref[...]                # (9, HW) 0/1 halo masks

    def shifted(xs, t):
        """Flat image shifted by tap t with an exact zero halo (roll wrap lands on masked pixels)."""
        dy, dx = t // 3, t % 3
        off = (dy - 1) * W + (dx - 1)
        if off == 0:
            return xs                                         # centre tap: always in bounds
        # TODO(synk): switch to pltpu.roll (XLU rotate) once shapes grow; jnp.roll keeps
        #             the lowering maximally portable at these tiny sizes.
        return jnp.roll(xs, -off, axis=1) * masks[t:t + 1, :]

    # ---- im2col: single (9*Cin, nb*HW) operand so the 3x3 conv is ONE K=9*Cin matmul ----
    taps = []
    for t in range(9):
        cols = [shifted(x[s], t) for s in range(nb)]
        taps.append(cols[0] if nb == 1 else jnp.concatenate(cols, axis=1))
    im2col = jnp.concatenate(taps, axis=0)                    # (9*Cin, nb*HW)

    # ---- exp_conv (3x3, BN scale folded) + folded bias + ReLU6 ----
    h = jnp.dot(w_exp_ref[...], im2col, preferred_element_type=jnp.float32)
    h = jnp.clip(h + b_exp_ref[...], 0.0, 6.0)                # (Cmid, nb*HW)

    # ---- SE: per-sample GAP (lane reduction) -> FC+ReLU -> FC+sigmoid -> channel gate ----
    h3 = h.reshape(cmid, nb, hw)
    gap = jnp.mean(h3, axis=2)                                # (Cmid, nb)
    d = jnp.maximum(jnp.dot(w_sed_ref[...], gap, preferred_element_type=jnp.float32)
                    + b_sed_ref[...], 0.0)
    z = jnp.dot(w_seu_ref[...], d, preferred_element_type=jnp.float32) + b_seu_ref[...]
    gate = 1.0 / (1.0 + jnp.exp(-z))                          # sigmoid (exp -> EUP slot)
    # Gate applied as a tiny (Cmid,1) sublane broadcast over only 4*nb vregs in this layout.
    h = (h3 * gate[:, :, None]).reshape(cmid, nb * hw)

    # ---- pw_conv (1x1, BN scale folded) + folded bias + ReLU6 ----
    out = jnp.clip(jnp.dot(w_pw_ref[...], h, preferred_element_type=jnp.float32)
                   + b_pw_ref[...], 0.0, 6.0)                 # (Cout, nb*HW)

    # ---- residual (ReLU6 happens before the add, matching the module) ----
    x_all = x[0] if nb == 1 else jnp.concatenate([x[s] for s in range(nb)], axis=1)
    if has_sc:                                                # 1x1 conv shortcut (Cin != Cout)
        out = out + jnp.dot(w_sc_ref[...], x_all, preferred_element_type=jnp.float32)
    else:                                                     # identity shortcut: no matmul
        out = out + x_all

    # ---- lane-dense store: per-sample (Cout, HW) slabs, trailing dim = H*W ----
    for s in range(nb):
        o_ref[s] = out[:, s * hw:(s + 1) * hw].astype(o_ref.dtype)


@jax.jit
def fuse_mbottleneck(x, params):
    """x: (N, Cin, H, W) float32 (NCHW, PyTorch layout). Returns (N, Cout, H, W)."""
    N, cin, H, W = x.shape
    cmid = params['w_exp'].shape[0]
    cout = params['w_pw'].shape[0]
    hw = H * W
    has_sc = 'w_sc' in params

    # Samples per grid step: stack the batch into the matmul lane dim on single-TC chips
    # (v5e/v6e), but always keep >=2 parallel grid steps when N>=2 so v7x's two TCs split work.
    nb = N // 2 if (N >= 4 and N % 2 == 0) else 1
    n_blocks = N // nb

    x2 = x.reshape(N, cin, hw)                 # free reshape: NCHW is already channel-major
    masks = jnp.asarray(_tap_masks(H, W))      # (9, HW) compile-time constant

    w_names = ['w_exp', 'b_exp', 'w_sed', 'b_sed', 'w_seu', 'b_seu', 'w_pw', 'b_pw']
    if has_sc:
        w_names.append('w_sc')
    ws = [params[k] for k in w_names]

    kernel = functools.partial(_fuse_mbneck_kernel, H=H, W=W, cin=cin, cmid=cmid,
                               cout=cout, nb=nb, has_sc=has_sc)
    out = pl.pallas_call(
        kernel,
        out_shape=jax.ShapeDtypeStruct((N, cout, hw), jnp.float32),
        grid=(n_blocks,),
        in_specs=[pl.BlockSpec((nb, cin, hw), lambda i: (i, 0, 0)),
                  _const_spec(masks.shape)]
                 + [_const_spec(w.shape) for w in ws],
        out_specs=pl.BlockSpec((nb, cout, hw), lambda i: (i, 0, 0)),
        compiler_params=pltpu.CompilerParams(dimension_semantics=("parallel",)),
    )(x2, masks, *ws)
    return out.reshape(N, cout, H, W)


# --------------------------------------------------------------------------- #
# Deterministic synthetic parameters (mirrors the module's layer shapes)
# --------------------------------------------------------------------------- #
def init_raw_params(key, cin, cout, expansion=4):
    cmid = int(cin * expansion)
    ks = jax.random.split(key, 9)

    def bn(k, c):
        k1, k2, k3, k4 = jax.random.split(k, 4)
        return dict(gamma=1.0 + 0.1 * jax.random.normal(k1, (c,), jnp.float32),
                    beta=0.1 * jax.random.normal(k2, (c,), jnp.float32),
                    mean=0.1 * jax.random.normal(k3, (c,), jnp.float32),
                    var=1.0 + 0.1 * jnp.abs(jax.random.normal(k4, (c,), jnp.float32)))

    p = {}
    p['exp_w'] = 0.2 * jax.random.normal(ks[0], (3, 3, cin, cmid), jnp.float32)   # HWIO
    p['exp_bn'] = bn(ks[1], cmid)
    p['sed_w'] = 0.2 * jax.random.normal(ks[2], (cmid, cmid), jnp.float32)        # SE down (bias)
    p['sed_b'] = 0.1 * jax.random.normal(ks[3], (cmid,), jnp.float32)
    p['seu_w'] = 0.2 * jax.random.normal(ks[4], (cmid, cmid), jnp.float32)        # SE up (bias)
    p['seu_b'] = 0.1 * jax.random.normal(ks[5], (cmid,), jnp.float32)
    p['pw_w'] = 0.2 * jax.random.normal(ks[6], (cmid, cout), jnp.float32)
    p['pw_bn'] = bn(ks[7], cout)
    if cin != cout:
        p['sc_w'] = 0.2 * jax.random.normal(ks[8], (cin, cout), jnp.float32)      # shortcut 1x1
    return p


def fold_params(raw):
    """Fold eval-mode BN into conv weights (scale) + bias columns; pre-transpose for (C, pixels)."""
    eps = 1e-5
    cin, cmid = raw['exp_w'].shape[2], raw['exp_w'].shape[3]
    cout = raw['pw_w'].shape[1]

    def fold_bn(bn):
        s = bn['gamma'] / jnp.sqrt(bn['var'] + eps)
        return s, bn['beta'] - bn['mean'] * s

    se_s, se_b = fold_bn(raw['exp_bn'])
    pw_s, pw_b = fold_bn(raw['pw_bn'])

    p = {}
    # 3x3 conv -> (Cmid, 9*Cin); column index t*Cin + ci matches the kernel's im2col row order.
    p['w_exp'] = (raw['exp_w'] * se_s[None, None, None, :]).reshape(9 * cin, cmid).T
    p['b_exp'] = se_b.reshape(cmid, 1)
    # SE FCs, transposed for the (C, pixels) working layout.
    p['w_sed'] = raw['sed_w'].T
    p['b_sed'] = raw['sed_b'].reshape(cmid, 1)
    p['w_seu'] = raw['seu_w'].T
    p['b_seu'] = raw['seu_b'].reshape(cmid, 1)
    # 1x1 pw conv with BN scale folded, transposed.
    p['w_pw'] = (raw['pw_w'] * pw_s[None, :]).T
    p['b_pw'] = pw_b.reshape(cout, 1)
    # Shortcut weight only when the module has a real 1x1 shortcut (Cin != Cout).
    if 'sc_w' in raw:
        p['w_sc'] = raw['sc_w'].T
    return p


# --------------------------------------------------------------------------- #
# Pure-JAX reference (verification only), NCHW like the PyTorch module
# --------------------------------------------------------------------------- #
def reference(x, raw):
    eps = 1e-5
    h = lax.conv_general_dilated(x, raw['exp_w'], (1, 1), 'SAME',
                                 dimension_numbers=('NCHW', 'HWIO', 'NCHW'))
    bn = raw['exp_bn']
    s = bn['gamma'] / jnp.sqrt(bn['var'] + eps)
    b = bn['beta'] - bn['mean'] * s
    h = jnp.clip(h * s[None, :, None, None] + b[None, :, None, None], 0.0, 6.0)
    # SE block
    g = jnp.mean(h, axis=(2, 3), keepdims=True)
    d = jnp.maximum(jnp.einsum('nchw,cd->ndhw', g, raw['sed_w'])
                    + raw['sed_b'][None, :, None, None], 0.0)
    u = jax.nn.sigmoid(jnp.einsum('nchw,cd->ndhw', d, raw['seu_w'])
                       + raw['seu_b'][None, :, None, None])
    h = h * u
    # pw conv
    h = jnp.einsum('nchw,cd->ndhw', h, raw['pw_w'])
    bn = raw['pw_bn']
    s = bn['gamma'] / jnp.sqrt(bn['var'] + eps)
    b = bn['beta'] - bn['mean'] * s
    h = jnp.clip(h * s[None, :, None, None] + b[None, :, None, None], 0.0, 6.0)
    # shortcut + residual
    res = jnp.einsum('nchw,cd->ndhw', x, raw['sc_w']) if 'sc_w' in raw else x
    return h + res


if __name__ == "__main__":
    key = jax.random.PRNGKey(0)
    kx, kp = jax.random.split(key)

    N, Cin, H, W, Cout = 2, 4, 16, 16, 8          # internal_expansion=4 -> Cmid=16
    x = jax.random.normal(kx, (N, Cin, H, W), jnp.float32)   # NCHW, like the PyTorch module

    raw = init_raw_params(kp, Cin, Cout, expansion=4)
    params = fold_params(raw)

    out = jax.block_until_ready(fuse_mbottleneck(x, params))

    ref = reference(x, raw)
    np.testing.assert_allclose(np.asarray(out), np.asarray(ref), rtol=1e-3, atol=1e-3)

    print("KERNEL_OK")
</pallas_src>

<mosaic_0001>
module attributes {stable_mosaic.version = 11 : i64} {
  func.func @_fuse_mbneck_kernel(%arg0: i32, %arg1: memref<1x4x256xf32, #tpu.memory_space<vmem>>, %arg2: memref<9x256xf32, #tpu.memory_space<vmem>>, %arg3: memref<16x36xf32, #tpu.memory_space<vmem>>, %arg4: memref<16x1xf32, #tpu.memory_space<vmem>>, %arg5: memref<16x16xf32, #tpu.memory_space<vmem>>, %arg6: memref<16x1xf32, #tpu.memory_space<vmem>>, %arg7: memref<16x16xf32, #tpu.memory_space<vmem>>, %arg8: memref<16x1xf32, #tpu.memory_space<vmem>>, %arg9: memref<8x16xf32, #tpu.memory_space<vmem>>, %arg10: memref<8x1xf32, #tpu.memory_space<vmem>>, %arg11: memref<8x4xf32, #tpu.memory_space<vmem>>, %arg12: memref<1x8x256xf32, #tpu.memory_space<vmem>>) attributes {dimension_semantics = [#tpu.dimension_semantics<parallel>], iteration_bounds = array<i64: 2>, scalar_prefetch = 0 : i64, scratch_operands = 0 : i64, tpu.core_type = #tpu.core_type<tc>, window_params = [{transform_indices = @transform_0, window_bounds = array<i64: 1, 4, 256>}, {pipeline_mode = #tpu.pipeline_mode<synchronous>, transform_indices = @transform_1, window_bounds = array<i64: 9, 256>}, {pipeline_mode = #tpu.pipeline_mode<synchronous>, transform_indices = @transform_2, window_bounds = array<i64: 16, 36>}, {pipeline_mode = #tpu.pipeline_mode<synchronous>, transform_indices = @transform_3, window_bounds = array<i64: 16, 1>}, {pipeline_mode = #tpu.pipeline_mode<synchronous>, transform_indices = @transform_4, window_bounds = array<i64: 16, 16>}, {pipeline_mode = #tpu.pipeline_mode<synchronous>, transform_indices = @transform_5, window_bounds = array<i64: 16, 1>}, {pipeline_mode = #tpu.pipeline_mode<synchronous>, transform_indices = @transform_6, window_bounds = array<i64: 16, 16>}, {pipeline_mode = #tpu.pipeline_mode<synchronous>, transform_indices = @transform_7, window_bounds = array<i64: 16, 1>}, {pipeline_mode = #tpu.pipeline_mode<synchronous>, transform_indices = @transform_8, window_bounds = array<i64: 8, 16>}, {pipeline_mode = #tpu.pipeline_mode<synchronous>, transform_indices = @transform_9, window_bounds = array<i64: 8, 1>}, {pipeline_mode = #tpu.pipeline_mode<synchronous>, transform_indices = @transform_10, window_bounds = array<i64: 8, 4>}, {transform_indices = @transform_11, window_bounds = array<i64: 1, 8, 256>}]} {
    %c0 = arith.constant 0 : index
    %c0_0 = arith.constant 0 : index
    %c0_1 = arith.constant 0 : index
    %0 = vector.load %arg1[%c0, %c0_0, %c0_1] : memref<1x4x256xf32, #tpu.memory_space<vmem>>, vector<1x4x256xf32>
    %c0_2 = arith.constant 0 : index
    %c0_3 = arith.constant 0 : index
    %1 = vector.load %arg2[%c0_2, %c0_3] : memref<9x256xf32, #tpu.memory_space<vmem>>, vector<9x256xf32>
    %2 = vector.shape_cast %0 : vector<1x4x256xf32> to vector<4x256xf32>
    %3 = vector.extract_strided_slice %2 {offsets = [0, 239], sizes = [4, 17], strides = [1, 1]} : vector<4x256xf32> to vector<4x17xf32>
    %4 = vector.extract_strided_slice %2 {offsets = [0, 0], sizes = [4, 239], strides = [1, 1]} : vector<4x256xf32> to vector<4x239xf32>
    %5 = tpu.concatenate %3, %4 in 1 : vector<4x17xf32>, vector<4x239xf32> -> vector<4x256xf32>
    %6 = vector.extract_strided_slice %1 {offsets = [0, 0], sizes = [1, 256], strides = [1, 1]} : vector<9x256xf32> to vector<1x256xf32>
    %7 = vector.broadcast %6 : vector<1x256xf32> to vector<4x256xf32>
    %8 = arith.mulf %5, %7 : vector<4x256xf32>
    %9 = vector.shape_cast %0 : vector<1x4x256xf32> to vector<4x256xf32>
    %10 = vector.extract_strided_slice %9 {offsets = [0, 240], sizes = [4, 16], strides = [1, 1]} : vector<4x256xf32> to vector<4x16xf32>
    %11 = vector.extract_strided_slice %9 {offsets = [0, 0], sizes = [4, 240], strides = [1, 1]} : vector<4x256xf32> to vector<4x240xf32>
    %12 = tpu.concatenate %10, %11 in 1 : vector<4x16xf32>, vector<4x240xf32> -> vector<4x256xf32>
    %13 = vector.extract_strided_slice %1 {offsets = [1, 0], sizes = [1, 256], strides = [1, 1]} : vector<9x256xf32> to vector<1x256xf32>
    %14 = vector.broadcast %13 : vector<1x256xf32> to vector<4x256xf32>
    %15 = arith.mulf %12, %14 : vector<4x256xf32>
    %16 = vector.shape_cast %0 : vector<1x4x256xf32> to vector<4x256xf32>
    %17 = vector.extract_strided_slice %16 {offsets = [0, 241], sizes = [4, 15], strides = [1, 1]} : vector<4x256xf32> to vector<4x15xf32>
    %18 = vector.extract_strided_slice %16 {offsets = [0, 0], sizes = [4, 241], strides = [1, 1]} : vector<4x256xf32> to vector<4x241xf32>
    %19 = tpu.concatenate %17, %18 in 1 : vector<4x15xf32>, vector<4x241xf32> -> vector<4x256xf32>
    %20 = vector.extract_strided_slice %1 {offsets = [2, 0], sizes = [1, 256], strides = [1, 1]} : vector<9x256xf32> to vector<1x256xf32>
    %21 = vector.broadcast %20 : vector<1x256xf32> to vector<4x256xf32>
    %22 = arith.mulf %19, %21 : vector<4x256xf32>
    %23 = vector.shape_cast %0 : vector<1x4x256xf32> to vector<4x256xf32>
    %24 = vector.extract_strided_slice %23 {offsets = [0, 255], sizes = [4, 1], strides = [1, 1]} : vector<4x256xf32> to vector<4x1xf32>
    %25 = vector.extract_strided_slice %23 {offsets = [0, 0], sizes = [4, 255], strides = [1, 1]} : vector<4x256xf32> to vector<4x255xf32>
    %26 = tpu.concatenate %24, %25 in 1 : vector<4x1xf32>, vector<4x255xf32> -> vector<4x256xf32>
    %27 = vector.extract_strided_slice %1 {offsets = [3, 0], sizes = [1, 256], strides = [1, 1]} : vector<9x256xf32> to vector<1x256xf32>
    %28 = vector.broadcast %27 : vector<1x256xf32> to vector<4x256xf32>
    %29 = arith.mulf %26, %28 : vector<4x256xf32>
    %30 = vector.shape_cast %0 : vector<1x4x256xf32> to vector<4x256xf32>
    %31 = vector.shape_cast %0 : vector<1x4x256xf32> to vector<4x256xf32>
    %32 = vector.extract_strided_slice %31 {offsets = [0, 1], sizes = [4, 255], strides = [1, 1]} : vector<4x256xf32> to vector<4x255xf32>
    %33 = vector.extract_strided_slice %31 {offsets = [0, 0], sizes = [4, 1], strides = [1, 1]} : vector<4x256xf32> to vector<4x1xf32>
    %34 = tpu.concatenate %32, %33 in 1 : vector<4x255xf32>, vector<4x1xf32> -> vector<4x256xf32>
    %35 = vector.extract_strided_slice %1 {offsets = [5, 0], sizes = [1, 256], strides = [1, 1]} : vector<9x256xf32> to vector<1x256xf32>
    %36 = vector.broadcast %35 : vector<1x256xf32> to vector<4x256xf32>
    %37 = arith.mulf %34, %36 : vector<4x256xf32>
    %38 = vector.shape_cast %0 : vector<1x4x256xf32> to vector<4x256xf32>
    %39 = vector.extract_strided_slice %38 {offsets = [0, 15], sizes = [4, 241], strides = [1, 1]} : vector<4x256xf32> to vector<4x241xf32>
    %40 = vector.extract_strided_slice %38 {offsets = [0, 0], sizes = [4, 15], strides = [1, 1]} : vector<4x256xf32> to vector<4x15xf32>
    %41 = tpu.concatenate %39, %40 in 1 : vector<4x241xf32>, vector<4x15xf32> -> vector<4x256xf32>
    %42 = vector.extract_strided_slice %1 {offsets = [6, 0], sizes = [1, 256], strides = [1, 1]} : vector<9x256xf32> to vector<1x256xf32>
    %43 = vector.broadcast %42 : vector<1x256xf32> to vector<4x256xf32>
    %44 = arith.mulf %41, %43 : vector<4x256xf32>
    %45 = vector.shape_cast %0 : vector<1x4x256xf32> to vector<4x256xf32>
    %46 = vector.extract_strided_slice %45 {offsets = [0, 16], sizes = [4, 240], strides = [1, 1]} : vector<4x256xf32> to vector<4x240xf32>
    %47 = vector.extract_strided_slice %45 {offsets = [0, 0], sizes = [4, 16], strides = [1, 1]} : vector<4x256xf32> to vector<4x16xf32>
    %48 = tpu.concatenate %46, %47 in 1 : vector<4x240xf32>, vector<4x16xf32> -> vector<4x256xf32>
    %49 = vector.extract_strided_slice %1 {offsets = [7, 0], sizes = [1, 256], strides = [1, 1]} : vector<9x256xf32> to vector<1x256xf32>
    %50 = vector.broadcast %49 : vector<1x256xf32> to vector<4x256xf32>
    %51 = arith.mulf %48, %50 : vector<4x256xf32>
    %52 = vector.shape_cast %0 : vector<1x4x256xf32> to vector<4x256xf32>
    %53 = vector.extract_strided_slice %52 {offsets = [0, 17], sizes = [4, 239], strides = [1, 1]} : vector<4x256xf32> to vector<4x239xf32>
    %54 = vector.extract_strided_slice %52 {offsets = [0, 0], sizes = [4, 17], strides = [1, 1]} : vector<4x256xf32> to vector<4x17xf32>
    %55 = tpu.concatenate %53, %54 in 1 : vector<4x239xf32>, vector<4x17xf32> -> vector<4x256xf32>
    %56 = vector.extract_strided_slice %1 {offsets = [8, 0], sizes = [1, 256], strides = [1, 1]} : vector<9x256xf32> to vector<1x256xf32>
    %57 = vector.broadcast %56 : vector<1x256xf32> to vector<4x256xf32>
    %58 = arith.mulf %55, %57 : vector<4x256xf32>
    %59 = tpu.concatenate %8, %15, %22, %29, %30, %37, %44, %51, %58 in 0 : vector<4x256xf32>, vector<4x256xf32>, vector<4x256xf32>, vector<4x256xf32>, vector<4x256xf32>, vector<4x256xf32>, vector<4x256xf32>, vector<4x256xf32>, vector<4x256xf32> -> vector<36x256xf32>
    %c0_4 = arith.constant 0 : index
    %c0_5 = arith.constant 0 : index
    %60 = vector.load %arg3[%c0_4, %c0_5] : memref<16x36xf32, #tpu.memory_space<vmem>>, vector<16x36xf32>
    %cst = arith.constant dense<0.000000e+00> : vector<16x256xf32>
    %61 = tpu.matmul %60, %59, %cst {dimension_numbers = #tpu.dot_dimension_numbers<[1], [0], [0], [1], [0, 0, 1, 1], [], []>} : vector<16x36xf32>, vector<36x256xf32>, vector<16x256xf32> -> vector<16x256xf32>
    %c0_6 = arith.constant 0 : index
    %c0_7 = arith.constant 0 : index
    %62 = vector.load %arg4[%c0_6, %c0_7] : memref<16x1xf32, #tpu.memory_space<vmem>>, vector<16x1xf32>
    %63 = vector.broadcast %62 : vector<16x1xf32> to vector<16x256xf32>
    %64 = arith.addf %61, %63 : vector<16x256xf32>
    %cst_8 = arith.constant 0.000000e+00 : f32
    %cst_9 = arith.constant 6.000000e+00 : f32
    %65 = vector.broadcast %cst_8 : f32 to vector<16x256xf32>
    %66 = arith.maximumf %65, %64 : vector<16x256xf32>
    %67 = vector.broadcast %cst_9 : f32 to vector<16x256xf32>
    %68 = arith.minimumf %67, %66 : vector<16x256xf32>
    %69 = vector.shape_cast %68 : vector<16x256xf32> to vector<16x1x256xf32>
    %cst_10 = arith.constant dense<0.000000e+00> : vector<16x1xf32>
    %70 = vector.multi_reduction <add>, %69, %cst_10 [2] : vector<16x1x256xf32> to vector<16x1xf32>
    %cst_11 = arith.constant 2.560000e+02 : f32
    %71 = vector.broadcast %cst_11 : f32 to vector<16x1xf32>
    %72 = arith.divf %70, %71 : vector<16x1xf32>
    %c0_12 = arith.constant 0 : index
    %c0_13 = arith.constant 0 : index
    %73 = vector.load %arg5[%c0_12, %c0_13] : memref<16x16xf32, #tpu.memory_space<vmem>>, vector<16x16xf32>
    %cst_14 = arith.constant dense<0.000000e+00> : vector<16x1xf32>
    %74 = tpu.matmul %73, %72, %cst_14 {dimension_numbers = #tpu.dot_dimension_numbers<[1], [0], [0], [1], [0, 0, 1, 1], [], []>} : vector<16x16xf32>, vector<16x1xf32>, vector<16x1xf32> -> vector<16x1xf32>
    %c0_15 = arith.constant 0 : index
    %c0_16 = arith.constant 0 : index
    %75 = vector.load %arg6[%c0_15, %c0_16] : memref<16x1xf32, #tpu.memory_space<vmem>>, vector<16x1xf32>
    %76 = arith.addf %74, %75 : vector<16x1xf32>
    %cst_17 = arith.constant 0.000000e+00 : f32
    %77 = vector.broadcast %cst_17 : f32 to vector<16x1xf32>
    %78 = arith.maximumf %76, %77 : vector<16x1xf32>
    %c0_18 = arith.constant 0 : index
    %c0_19 = arith.constant 0 : index
    %79 = vector.load %arg7[%c0_18, %c0_19] : memref<16x16xf32, #tpu.memory_space<vmem>>, vector<16x16xf32>
    %cst_20 = arith.constant dense<0.000000e+00> : vector<16x1xf32>
    %80 = tpu.matmul %79, %78, %cst_20 {dimension_numbers = #tpu.dot_dimension_numbers<[1], [0], [0], [1], [0, 0, 1, 1], [], []>} : vector<16x16xf32>, vector<16x1xf32>, vector<16x1xf32> -> vector<16x1xf32>
    %c0_21 = arith.constant 0 : index
    %c0_22 = arith.constant 0 : index
    %81 = vector.load %arg8[%c0_21, %c0_22] : memref<16x1xf32, #tpu.memory_space<vmem>>, vector<16x1xf32>
    %82 = arith.addf %80, %81 : vector<16x1xf32>
    %cst_23 = arith.constant 0.000000e+00 : f32
    %83 = vector.broadcast %cst_23 : f32 to vector<16x1xf32>
    %84 = arith.subf %83, %82 : vector<16x1xf32>
    %85 = math.exp %84 : vector<16x1xf32>
    %cst_24 = arith.constant 1.000000e+00 : f32
    %86 = vector.broadcast %cst_24 : f32 to vector<16x1xf32>
    %87 = arith.addf %86, %85 : vector<16x1xf32>
    %cst_25 = arith.constant 1.000000e+00 : f32
    %88 = vector.broadcast %cst_25 : f32 to vector<16x1xf32>
    %89 = arith.divf %88, %87 : vector<16x1xf32>
    %90 = vector.shape_cast %89 : vector<16x1xf32> to vector<16x1x1xf32>
    %91 = vector.broadcast %90 : vector<16x1x1xf32> to vector<16x1x256xf32>
    %92 = arith.mulf %69, %91 : vector<16x1x256xf32>
    %93 = vector.shape_cast %92 : vector<16x1x256xf32> to vector<16x256xf32>
    %c0_26 = arith.constant 0 : index
    %c0_27 = arith.constant 0 : index
    %94 = vector.load %arg9[%c0_26, %c0_27] : memref<8x16xf32, #tpu.memory_space<vmem>>, vector<8x16xf32>
    %cst_28 = arith.constant dense<0.000000e+00> : vector<8x256xf32>
    %95 = tpu.matmul %94, %93, %cst_28 {dimension_numbers = #tpu.dot_dimension_numbers<[1], [0], [0], [1], [0, 0, 1, 1], [], []>} : vector<8x16xf32>, vector<16x256xf32>, vector<8x256xf32> -> vector<8x256xf32>
    %c0_29 = arith.constant 0 : index
    %c0_30 = arith.constant 0 : index
    %96 = vector.load %arg10[%c0_29, %c0_30] : memref<8x1xf32, #tpu.memory_space<vmem>>, vector<8x1xf32>
    %97 = vector.broadcast %96 : vector<8x1xf32> to vector<8x256xf32>
    %98 = arith.addf %95, %97 : vector<8x256xf32>
    %cst_31 = arith.constant 0.000000e+00 : f32
    %cst_32 = arith.constant 6.000000e+00 : f32
    %99 = vector.broadcast %cst_31 : f32 to vector<8x256xf32>
    %100 = arith.maximumf %99, %98 : vector<8x256xf32>
    %101 = vector.broadcast %cst_32 : f32 to vector<8x256xf32>
    %102 = arith.minimumf %101, %100 : vector<8x256xf32>
    %103 = vector.shape_cast %0 : vector<1x4x256xf32> to vector<4x256xf32>
    %c0_33 = arith.constant 0 : index
    %c0_34 = arith.constant 0 : index
    %104 = vector.load %arg11[%c0_33, %c0_34] : memref<8x4xf32, #tpu.memory_space<vmem>>, vector<8x4xf32>
    %cst_35 = arith.constant dense<0.000000e+00> : vector<8x256xf32>
    %105 = tpu.matmul %104, %103, %cst_35 {dimension_numbers = #tpu.dot_dimension_numbers<[1], [0], [0], [1], [0, 0, 1, 1], [], []>} : vector<8x4xf32>, vector<4x256xf32>, vector<8x256xf32> -> vector<8x256xf32>
    %106 = arith.addf %102, %105 : vector<8x256xf32>
    %c0_36 = arith.constant 0 : index
    %c0_37 = arith.constant 0 : index
    %c0_38 = arith.constant 0 : index
    %107 = vector.load %arg12[%c0_36, %c0_37, %c0_38] : memref<1x8x256xf32, #tpu.memory_space<vmem>>, vector<1x8x256xf32>
    %108 = vector.shape_cast %107 : vector<1x8x256xf32> to vector<8x256xf32>
    %109 = vector.shape_cast %106 : vector<8x256xf32> to vector<1x8x256xf32>
    tpu.vector_store %arg12[%c0_36, %c0_37, %c0_38], %109 {strides = array<i32>} : memref<1x8x256xf32, #tpu.memory_space<vmem>>, vector<1x8x256xf32>,
    return
  }
  func.func @transform_0(%arg0: i32) -> (i32, i32, i32) {
    %c0_i32 = arith.constant 0 : i32
    %c0_i32_0 = arith.constant 0 : i32
    %c0_i32_1 = arith.constant 0 : i32
    return %arg0, %c0_i32, %c0_i32_0 : i32, i32, i32
  }
  func.func @transform_1(%arg0: i32) -> (i32, i32) {
    %c0_i32 = arith.constant 0 : i32
    %c0_i32_0 = arith.constant 0 : i32
    %c0_i32_1 = arith.constant 0 : i32
    return %c0_i32, %c0_i32_0 : i32, i32
  }
  func.func @transform_2(%arg0: i32) -> (i32, i32) {
    %c0_i32 = arith.constant 0 : i32
    %c0_i32_0 = arith.constant 0 : i32
    %c0_i32_1 = arith.constant 0 : i32
    return %c0_i32, %c0_i32_0 : i32, i32
  }
  func.func @transform_3(%arg0: i32) -> (i32, i32) {
    %c0_i32 = arith.constant 0 : i32
    %c0_i32_0 = arith.constant 0 : i32
    %c0_i32_1 = arith.constant 0 : i32
    return %c0_i32, %c0_i32_0 : i32, i32
  }
  func.func @transform_4(%arg0: i32) -> (i32, i32) {
    %c0_i32 = arith.constant 0 : i32
    %c0_i32_0 = arith.constant 0 : i32
    %c0_i32_1 = arith.constant 0 : i32
    return %c0_i32, %c0_i32_0 : i32, i32
  }
  func.func @transform_5(%arg0: i32) -> (i32, i32) {
    %c0_i32 = arith.constant 0 : i32
    %c0_i32_0 = arith.constant 0 : i32
    %c0_i32_1 = arith.constant 0 : i32
    return %c0_i32, %c0_i32_0 : i32, i32
  }
  func.func @transform_6(%arg0: i32) -> (i32, i32) {
    %c0_i32 = arith.constant 0 : i32
    %c0_i32_0 = arith.constant 0 : i32
    %c0_i32_1 = arith.constant 0 : i32
    return %c0_i32, %c0_i32_0 : i32, i32
  }
  func.func @transform_7(%arg0: i32) -> (i32, i32) {
    %c0_i32 = arith.constant 0 : i32
    %c0_i32_0 = arith.constant 0 : i32
    %c0_i32_1 = arith.constant 0 : i32
    return %c0_i32, %c0_i32_0 : i32, i32
  }
  func.func @transform_8(%arg0: i32) -> (i32, i32) {
    %c0_i32 = arith.constant 0 : i32
    %c0_i32_0 = arith.constant 0 : i32
    %c0_i32_1 = arith.constant 0 : i32
    return %c0_i32, %c0_i32_0 : i32, i32
  }
  func.func @transform_9(%arg0: i32) -> (i32, i32) {
    %c0_i32 = arith.constant 0 : i32
    %c0_i32_0 = arith.constant 0 : i32
    %c0_i32_1 = arith.constant 0 : i32
    return %c0_i32, %c0_i32_0 : i32, i32
  }
  func.func @transform_10(%arg0: i32) -> (i32, i32) {
    %c0_i32 = arith.constant 0 : i32
    %c0_i32_0 = arith.constant 0 : i32
    %c0_i32_1 = arith.constant 0 : i32
    return %c0_i32, %c0_i32_0 : i32, i32
  }
  func.func @transform_11(%arg0: i32) -> (i32, i32, i32) {
    %c0_i32 = arith.constant 0 : i32
    %c0_i32_0 = arith.constant 0 : i32
    %c0_i32_1 = arith.constant 0 : i32
    return %arg0, %c0_i32, %c0_i32_0 : i32, i32, i32
  }
}

</mosaic_0001>

<bundles_post_ra>
// kernel: fuse_mbottleneck.1
= control target key start
LH: loop header
LB: loop body
LE: loop exit
PB: predicated region body
PF: predicated region fallthrough
CT: control target
= control target key end

     0   :  { %s2114_s17 = smov 0   ;;  %s2514_s0 = inlined_call_operand.vmem [shape: f32[2,4,256], index: 0, kind: input, shape index: {}]   ;;  %s2515_s1 = inlined_call_operand.vmem [shape: f32[9,256], index: 1, kind: input, shape index: {}]   ;;  %s2516_s2 = inlined_call_operand.vmem [shape: f32[16,36], index: 2, kind: input, shape index: {}]   ;;  %s2517_s3 = inlined_call_operand.vmem [shape: f32[16,1], index: 3, kind: input, shape index: {}]   ;;  %s2518_s4 = inlined_call_operand.vmem [shape: f32[16,16], index: 4, kind: input, shape index: {}]   ;;  %s2519_s5 = inlined_call_operand.vmem [shape: f32[16,1], index: 5, kind: input, shape index: {}]   ;;  %s2520_s6 = inlined_call_operand.vmem [shape: f32[16,16], index: 6, kind: input, shape index: {}]   ;;  %s2521_s7 = inlined_call_operand.vmem [shape: f32[16,1], index: 7, kind: input, shape index: {}]   ;;  %s2522_s8 = inlined_call_operand.vmem [shape: f32[8,16], index: 8, kind: input, shape index: {}]   ;;  %s2523_s9 = inlined_call_operand.vmem [shape: f32[8,1], index: 9, kind: input, shape index: {}]   ;;  %s2524_s10 = inlined_call_operand.vmem [shape: f32[8,4], index: 10, kind: input, shape index: {}]   ;;  %s2525_s11 = inlined_call_operand.vmem [shape: f32[2,8,256], index: 11, kind: output, shape index: {}]  }
   0x1 LB: > { %s1935_s18 = sadd.s32 4294967295, %s2041_s17   ;;  %p1939_p0 = scmp.ge.s32.totalorder %s2041_s17, 1  ;;  %s2041_s17 = sphi %s2114_s17, %s21_s17  }
   0x2   : > { %p337_p1 = scmp.lt.s32.totalorder %s2041_s17, 3 }
   0x4   : > { %p338_p2 = pnand %p1939_p0, %p337_p1 }
   0x5   : > { %p377_p3 = scmp.lt.s32.totalorder (!%p338_p2), %s1935_s18, 1  ;;  %s2043_s23 = smov (!%p338_p2), 1   ;;  %v2049_v2 = vmov (!%p338_p2), 0.0   ;;  %v2052_v3 = vmov (!%p338_p2), 0   ;;  %v590_v4 = vld [vmem:[%s2517_s3] sm:$0xff] (!%p338_p2)  ;;  %v591_v5 = vld [vmem:[%s2517_s3 + $0x8] sm:$0xff] (!%p338_p2)  ;;  %v404_v6 = vlaneseq (!%p338_p2) }
   0x6   : > { %341 = sbr.rel (%p338_p2) target bundleno = 1450 (0x5aa), region = 64  ;;  %s2044_s24 = smov (!%p338_p2), 16   ;;  %679 = vmatprep.mubr.f32.mxu0 (!%p338_p2), %v2049_v2  ;;  %2023 = vset.pattern.permute.xlu0 (!%p338_p2), %v2052_v3  ;;  %v2168_v11 = vld [vmem:[%s2515_s1] sm:$0xff] (!%p338_p2)  ;;  %v2173_v12 = vld [vmem:[%s2515_s1 + $0x8] sm:$0xff] (!%p338_p2)  ;;  %vm419_vm0 = vcmask (!%p338_p2), 130048   ;;  %vm459_vm1 = vcmask (!%p338_p2), 7168  }
   0x7   : > { %s2045_s25 = smov (!%p338_p2), 17   ;;  %s2046_s26 = smov (!%p338_p2), 15   ;;  %2024 = vset.pattern.permute.xlu1 (!%p338_p2), %v2052_v3  ;;  %v2160_v7 = vshrl.u32 (!%p338_p2), %v404_v6, 7  ;;  %vm399_vm2 = vcmask (!%p338_p2), 138240   ;;  %vm439_vm3 = vcmask (!%p338_p2), 121856   ;;  %vm579_vm4 = vcmask (!%p338_p2), 1043456  }
   0x8   : > { %s2047_s27 = smov (!%p338_p2), 127   ;;  %s2048_s28 = smov (!%p338_p2), 112   ;;  %vm478_vm5 = vcmask (!%p338_p2), 1039360   ;;  %vm518_vm6 = vcmask (!%p338_p2), 916480   ;;  %vm498_vm7 = vcmask (!%p338_p2), 924672   ;;  %vm538_vm8 = vcmask (!%p338_p2), 908288  }
   0x9   : > { %s2050_s29 = smov (!%p338_p2), 113   ;;  %s2051_s30 = smov (!%p338_p2), 111   ;;  %v2163_v10 = vsub.s32 (!%p338_p2), 1, %v2160_v7  ;;  %v466_v13 = vsub.s32 (!%p338_p2), 3, %v2160_v7  ;;  %v2177_v15 = vsub.s32 (!%p338_p2), 0, %v2160_v7  ;;  %v446_v23 = vsub.s32 (!%p338_p2), 2, %v2160_v7 }
   0xa   : > { %v486_v38 = vsub.s32 (!%p338_p2), 5, %v2160_v7  ;;  %v526_v43 = vsub.s32 (!%p338_p2), 7, %v2160_v7  ;;  %vm602_vm9 = vcmask (!%p338_p2), 293888   ;;  %vm980_vm10 = vcmask (!%p338_p2), 1040384  }
   0xb   : > { %v427_v16 = vrot.slane (!%p338_p2), %v2168_v11, %v2163_v10  ;;  %v431_v17 = vrot.slane (!%p338_p2), %v2173_v12, %v2163_v10  ;;  %v467_v21 = vrot.slane (!%p338_p2), %v2168_v11, %v466_v13  ;;  %v471_v22 = vrot.slane (!%p338_p2), %v2173_v12, %v466_v13 }
   0xc   : > { %v407_v27 = vrot.slane (!%p338_p2), %v2168_v11, %v2177_v15  ;;  %v411_v28 = vrot.slane (!%p338_p2), %v2173_v12, %v2177_v15  ;;  %v447_v36 = vrot.slane (!%p338_p2), %v2168_v11, %v446_v23  ;;  %v451_v37 = vrot.slane (!%p338_p2), %v2173_v12, %v446_v23 }
   0xd   : > { %s2527_s18 = smov (!%p377_p3, %s1935_s18), 1  ;;  %v487_v52 = vrot.slane %v2168_v11, %v486_v38  ;;  %v491_v53 = vrot.slane %v2173_v12, %v486_v38  ;;  %v527_v3 = vrot.slane %v2168_v11, %v526_v43  ;;  %vm1099_vm11 = vcmask 1041409  }
   0xe   : > { %s1960_s19 = sshll.u32 %s2527_s18, 3  ;;  %vm1102_vm12 = vcmask 1042434   ;;  %vm1105_vm13 = vcmask 1043459   ;;  %vm1108_vm14 = vcmask 1044484   ;;  %vm1111_vm15 = vcmask 1045509   ;;  %s1961_s20 = sshll.u32 %s2527_s18, 4 }
   0xf   : > { %s2128_s22 = scalar_lea.vmem %s2514_s0, %s1960_s19 }
  0x10   : > { %v2131_v0 = vld [vmem:[%s2128_s22] sm:$0xff] }
  0x11   : > { %457 = vrot.lane.b32.xlu1 %v2131_v0, %s2043_s23  ;;  %417 = vrot.lane.b32.xlu0 %v2131_v0, %s2044_s24  ;;  %v2137_v1 = vcombine.high %v2131_v0, %v2131_v0 }
  0x15   : > { %397 = vrot.lane.b32.xlu1 %v2131_v0, %s2045_s25  ;;  %414 = vrot.lane.b32.xlu0 %v2137_v1, %s2044_s24 }
  0x19   : > { %454 = vrot.lane.b32.xlu1 %v2137_v1, %s2043_s23  ;;  %394 = vrot.lane.b32.xlu0 %v2137_v1, %s2045_s25  ;;  %s386_s23 = scalar_lea.vmem %s2525_s11, %s1961_s20 }
  0x1d   : > { %437 = vrot.lane.b32.xlu1 %v2131_v0, %s2046_s26  ;;  %434 = vrot.lane.b32.xlu0 %v2137_v1, %s2046_s26 }
  0x21   : > { %476 = vrot.lane.b32.xlu1 %v2137_v1, %s2047_s27  ;;  %474 = vrot.lane.b32.xlu0 %v2131_v0, %s2047_s27 }
  0x25   : > { %516 = vrot.lane.b32.xlu1 %v2137_v1, %s2048_s28  ;;  %514 = vrot.lane.b32.xlu0 %v2131_v0, %s2048_s28 }
  0x29   : > { %496 = vrot.lane.b32.xlu1 %v2137_v1, %s2050_s29  ;;  %494 = vrot.lane.b32.xlu0 %v2131_v0, %s2050_s29 }
  0x2d   : > { %536 = vrot.lane.b32.xlu1 %v2137_v1, %s2051_s30  ;;  %534 = vrot.lane.b32.xlu0 %v2131_v0, %s2051_s30 }
  0x31   : > { %594 = vperm.xlu0 %2023, %v590_v4   ;;  %599 = vperm.xlu1 %2024, %v591_v5   ;;  %v531_v4 = vrot.slane %v2173_v12, %v526_v43  ;;  %v506_v5 = vsub.s32 6, %v2160_v7  ;;  %v589_v43 = vld [vmem:[%s2516_s2 + $0x8] sm:$0xff] }
  0x83   : > { %v458_v8 = vpop.permute.xlu1 %457  ;;  %v418_v9 = vpop.permute.xlu0 %417 }
  0x87   : > { %v398_v14 = vpop.permute.xlu1 %397  ;;  %v415_v18 = vpop.permute.xlu0 %414 }
  0x88   : > { %v420_v19 = vsel %vm419_vm0, %v418_v9, %v415_v18  ;;  %v423_v20 = vsel %vm419_vm0, %v415_v18, %v418_v9 }
  0x89   : > { %v432_v24 = vmul.f32 %v427_v16, %v423_v20  ;;  %v433_v25 = vmul.f32 %v431_v17, %v420_v19  ;;  %v507_v19 = vrot.slane %v2168_v11, %v506_v5  ;;  %v511_v20 = vrot.slane %v2173_v12, %v506_v5 }
  0x8b   : > { %v455_v26 = vpop.permute.xlu1 %454  ;;  %v395_v29 = vpop.permute.xlu0 %394  ;;  %v556_v44 = vrot.slane %v432_v24, 4  ;;  %v557_v45 = vrot.slane %v433_v25, 4 }
  0x8c   : > { %v460_v30 = vsel %vm459_vm1, %v458_v8, %v455_v26  ;;  %v463_v31 = vsel %vm459_vm1, %v455_v26, %v458_v8  ;;  %v400_v32 = vsel %vm399_vm2, %v398_v14, %v395_v29  ;;  %v403_v33 = vsel %vm399_vm2, %v395_v29, %v398_v14 }
  0x8d   : > { %v472_v34 = vmul.f32 %v467_v21, %v463_v31  ;;  %v473_v35 = vmul.f32 %v471_v22, %v460_v30  ;;  %v412_v39 = vmul.f32 %v407_v27, %v403_v33  ;;  %v413_v40 = vmul.f32 %v411_v28, %v400_v32  ;;  %v1945_v31 = vld [vmem:[%s2515_s1 + $0x18] ss:$0 sm:$0xff] }
  0x8e   : > { %vm1114_vm1 = vcmask 1046534   ;;  %vm1117_vm2 = vcmask 1047559  }
  0x8f   : > { %v438_v41 = vpop.permute.xlu1 %437  ;;  %v435_v42 = vpop.permute.xlu0 %434  ;;  %v562_v48 = vrot.slane %v472_v34, 4  ;;  %v563_v49 = vrot.slane %v473_v35, 4  ;;  %v581_v56 = vsel %vm579_vm4, %v413_v40, %v557_v45  ;;  %v580_v58 = vsel %vm579_vm4, %v412_v39, %v556_v44 }
  0x90   : > { %v440_v46 = vsel %vm439_vm3, %v438_v41, %v435_v42  ;;  %v443_v47 = vsel %vm439_vm3, %v435_v42, %v438_v41  ;;  %v2053_v44 = vmov 1966171168   ;;  %vm1797_vm3 = vcmask 31744  }
  0x91   : > { %v452_v50 = vmul.f32 %v447_v36, %v443_v47  ;;  %v453_v51 = vmul.f32 %v451_v37, %v440_v46  ;;  %v1944_v37 = vld [vmem:[%s2515_s1 + $0x10] ss:$0 sm:$0xff]  ;;  %v707_v45 = vunpack.c.l.s4 %v2053_v44 }
  0x93   : > { %v477_v54 = vpop.permute.xlu1 %476  ;;  %v475_v55 = vpop.permute.xlu0 %474  ;;  %v583_v57 = vsel %vm579_vm4, %v453_v51, %v563_v49  ;;  %v582_v59 = vsel %vm579_vm4, %v452_v50, %v562_v48  ;;  %v708_v50 = vunpack.c.0.s8 %v707_v45 }
  0x94   : > { %v479_v60 = vsel %vm478_vm5, %v475_v55, %v477_v54  ;;  %v483_v61 = vsel %vm478_vm5, %v477_v54, %v475_v55  ;;  %v1984_v62 = vpack.c.bf16 %v583_v57, %v581_v56  ;;  %v1986_v63 = vpack.c.bf16 %v582_v59, %v580_v58 }
  0x95   : > { %v492_v6 = vmul.f32 %v487_v52, %v479_v60  ;;  %v493_v8 = vmul.f32 %v491_v53, %v483_v61  ;;  %v2233_v59 = vsub.s32 %v708_v50, %v2160_v7 }
  0x96   : > { %1985 = vmatprep.subr.bf16.mxu0 %v1984_v62 }
  0x97   : > { %v517_v9 = vpop.permute.xlu1 %516  ;;  %1987 = vmatpush1.bf16.msra.mxu0 %v1986_v63  ;;  %v515_v13 = vpop.permute.xlu0 %514  ;;  %v569_v21 = vrot.slane %v492_v6, 4  ;;  %v570_v22 = vrot.slane %v493_v8, 4 }
  0x98   : > { %v519_v14 = vsel %vm518_vm6, %v515_v13, %v517_v9  ;;  %v523_v16 = vsel %vm518_vm6, %v517_v9, %v515_v13 }
  0x99   : > { %v532_v17 = vmul.f32 %v527_v3, %v519_v14  ;;  %v533_v18 = vmul.f32 %v531_v4, %v523_v16  ;;  %v585_v11 = vsel %vm579_vm4, %v2137_v1, %v570_v22  ;;  %v584_v34 = vsel %vm579_vm4, %v2131_v0, %v569_v21  ;;  %v588_v0 = vld [vmem:[%s2516_s2] sm:$0xff] }
  0x9b   : > { %v497_v23 = vpop.permute.xlu1 %496  ;;  %v495_v24 = vpop.permute.xlu0 %494  ;;  %v575_v27 = vrot.slane %v532_v17, 4  ;;  %v576_v28 = vrot.slane %v533_v18, 4 }
  0x9c   : > { %v499_v25 = vsel %vm498_vm7, %v495_v24, %v497_v23  ;;  %v503_v26 = vsel %vm498_vm7, %v497_v23, %v495_v24 }
  0x9d   : > { %v512_v29 = vmul.f32 %v507_v19, %v499_v25  ;;  %v513_v30 = vmul.f32 %v511_v20, %v503_v26 }
  0x9f   : > { %v537_v32 = vpop.permute.xlu1 %536  ;;  %v587_v12 = vsel %vm579_vm4, %v513_v30, %v576_v28  ;;  %v535_v33 = vpop.permute.xlu0 %534  ;;  %v586_v35 = vsel %vm579_vm4, %v512_v29, %v575_v27 }
  0xa0   : > { %v1988_v36 = vpack.c.bf16 %v587_v12, %v585_v11  ;;  %v539_v38 = vsel %vm538_vm8, %v535_v33, %v537_v32  ;;  %v543_v39 = vsel %vm538_vm8, %v537_v32, %v535_v33  ;;  %v1990_v40 = vpack.c.bf16 %v586_v35, %v584_v34 }
  0xa1   : > { %v553_v41 = vmul.f32 %v1945_v31, %v543_v39  ;;  %v552_v42 = vmul.f32 %v1944_v37, %v539_v38 }
  0xa2   : > { %1989 = vmatprep.subr.bf16.mxu0 %v1988_v36 }
  0xa3   : > { %1991 = vmatpush1.bf16.msra.mxu0 %v1990_v40 }
  0xa4   : > { %1946 = vmatprep.subr.msk.mxu0 %vm579_vm4, %v553_v41 }
  0xa7   : > { %1947 = vmatpush1.msk.msra.mxu0 %vm579_vm4, %v552_v42 }
  0xa8   : > { %1948 = vmatmul.mubr.msk.f32.vlgmr.msra.gmra.mrb[0].mxu0 %vm602_vm9, %v588_v0 }
  0xa9   : > { %685 = vmatprep.mubr.f32.mxu0 %v2049_v2 }
  0xac   : > { %1949 = vmatmul.mubr.msk.f32.gmra.mrb[2].mxu0 %vm602_vm9, %v589_v43 }
  0xb0   : > { %v595_v46 = vpop.permute.xlu0 %594  ;;  %v600_v52 = vpop.permute.xlu1 %599 }
 0x17b   : > { %v681_v47 = vpop.f32.mrb[0].mxu0 }
 0x17c   : > { %v682_v48 = vadd.f32 %v681_v47, %v595_v46  ;;  %v683_v49 = vpop.f32.mrb[1].mxu0 }
 0x17d   : > { %v684_v51 = vadd.f32 %v683_v49, %v595_v46 }
 0x17e   : > { %v692_v53 = vmax.f32 %v682_v48, 0.0 }
 0x17f   : > { %v693_v54 = vmax.f32 %v684_v51, 0.0  ;;  %v687_v55 = vpop.f32.mrb[2].mxu0 }
 0x180   : > { %v696_v56 = vmin.f32 %v692_v53, 6.0  ;;  %v688_v57 = vadd.f32 %v687_v55, %v600_v52  ;;  %v689_v58 = vpop.f32.mrb[3].mxu0 }
 0x181   : > { %v697_v60 = vmin.f32 %v693_v54, 6.0  ;;  %v690_v61 = vadd.f32 %v689_v58, %v600_v52 }
 0x182   : > { %v694_v62 = vmax.f32 %v688_v57, 0.0 }
 0x183   : > { %v704_v63 = vcombine.low %v696_v56, %v697_v60  ;;  %v705_v3 = vcombine.high %v696_v56, %v697_v60  ;;  %v695_v4 = vmax.f32 %v690_v61, 0.0 }
 0x184   : > { %v698_v5 = vmin.f32 %v694_v62, 6.0 }
 0x185   : > { %v712_v6 = vrot.slane %v704_v63, %v2233_v59  ;;  %v719_v8 = vrot.slane %v705_v3, %v2233_v59  ;;  %v699_v9 = vmin.f32 %v695_v4, 6.0 }
 0x187   : > { %v720_v13 = vcombine.high %v712_v6, %v712_v6  ;;  %v2238_v14 = vrot.slane %v712_v6, %v2233_v59  ;;  %v2241_v16 = vrot.slane %v719_v8, %v2233_v59  ;;  %v721_v7 = vcombine.high %v719_v8, %v719_v8 }
 0x188   : > { %v754_v17 = vcombine.low %v698_v5, %v699_v9  ;;  %v755_v18 = vcombine.high %v698_v5, %v699_v9 }
 0x189   : > { %v2244_v19 = vrot.slane %v720_v13, %v2233_v59  ;;  %v823_v20 = vrot.slane %v2238_v14, %v2177_v15  ;;  %v827_v21 = vrot.slane %v2238_v14, %v2163_v10  ;;  %v855_v24 = vrot.slane %v2241_v16, %v2177_v15 }
 0x18a   : > { %v762_v22 = vrot.slane %v754_v17, %v2233_v59  ;;  %v769_v23 = vrot.slane %v755_v18, %v2233_v59  ;;  %v859_v25 = vrot.slane %v2241_v16, %v2163_v10  ;;  %v2263_v30 = vrot.slane %v721_v7, %v2233_v59 }
 0x18b   : > { %v981_v26 = vsel %vm980_vm10, %v823_v20, 0.0  ;;  %v982_v27 = vsel %vm980_vm10, %v827_v21, 0.0  ;;  %v831_v28 = vrot.slane %v2244_v19, %v2177_v15  ;;  %v835_v29 = vrot.slane %v2244_v19, %v2163_v10 }
 0x18c   : > { %v2266_v31 = vrot.slane %v762_v22, %v2233_v59  ;;  %v2269_v32 = vrot.slane %v769_v23, %v2233_v59  ;;  %v983_v11 = vadd.f32 %v982_v27, %v981_v26  ;;  %v1001_v34 = vsel %vm980_vm10, %v855_v24, 0.0 }
 0x18d   : > { %v986_v12 = vsel %vm980_vm10, %v831_v28, 0.0  ;;  %v987_v33 = vsel %vm980_vm10, %v835_v29, 0.0  ;;  %v770_v35 = vcombine.high %v762_v22, %v762_v22  ;;  %v771_v36 = vcombine.high %v769_v23, %v769_v23 }
 0x18e   : > { %v988_v37 = vadd.f32 %v987_v33, %v986_v12  ;;  %v1002_v38 = vsel %vm980_vm10, %v859_v25, 0.0  ;;  %984 = vadd.xlane.f32.xlu0 %v983_v11  ;;  %v2277_v40 = vcombine.high %v2244_v19, %v2244_v19  ;;  %v2281_v41 = vcombine.high %v2238_v14, %v2238_v14 }
 0x18f   : > { %v1003_v39 = vadd.f32 %v1002_v38, %v1001_v34  ;;  %v919_v42 = vrot.slane %v2269_v32, %v2177_v15  ;;  %v923_v0 = vrot.slane %v2269_v32, %v2163_v10  ;;  %v863_v43 = vrot.slane %v2263_v30, %v2177_v15 }
 0x190   : > { %989 = vadd.xlane.f32.xlu1 %v988_v37  ;;  %v867_v44 = vrot.slane %v2263_v30, %v2163_v10  ;;  %v2293_v45 = vcombine.high %v2266_v31, %v2266_v31  ;;  %v847_v46 = vrot.slane %v2277_v40, %v2177_v15  ;;  %v851_v47 = vrot.slane %v2277_v40, %v2163_v10 }
 0x191   : > { %v839_v48 = vrot.slane %v2281_v41, %v2177_v15  ;;  %v843_v49 = vrot.slane %v2281_v41, %v2163_v10  ;;  %v2304_v50 = vrot.slane %v770_v35, %v2233_v59  ;;  %v2307_v51 = vrot.slane %v771_v36, %v2233_v59 }
 0x192   : > { %v1041_v52 = vsel %vm980_vm10, %v919_v42, 0.0  ;;  %v1042_v53 = vsel %vm980_vm10, %v923_v0, 0.0  ;;  %1004 = vadd.xlane.f32.xlu0 %v1003_v39  ;;  %v996_v54 = vsel %vm980_vm10, %v847_v46, 0.0  ;;  %v997_v55 = vsel %vm980_vm10, %v851_v47, 0.0 }
 0x193   : > { %v991_v56 = vsel %vm980_vm10, %v839_v48, 0.0  ;;  %v992_v57 = vsel %vm980_vm10, %v843_v49, 0.0  ;;  %v998_v58 = vadd.f32 %v997_v55, %v996_v54  ;;  %v1006_v61 = vsel %vm980_vm10, %v863_v43, 0.0 }
 0x194   : > { %v993_v60 = vadd.f32 %v992_v57, %v991_v56  ;;  %v1007_v62 = vsel %vm980_vm10, %v867_v44, 0.0  ;;  %v903_v63 = vrot.slane %v2293_v45, %v2177_v15  ;;  %v907_v3 = vrot.slane %v2293_v45, %v2163_v10 }
 0x195   : > { %v887_v4 = vrot.slane %v2266_v31, %v2177_v15  ;;  %v891_v5 = vrot.slane %v2266_v31, %v2163_v10  ;;  %999 = vadd.xlane.f32.xlu1 %v998_v58  ;;  %v1043_v6 = vadd.f32 %v1042_v53, %v1041_v52  ;;  %v1008_v8 = vadd.f32 %v1007_v62, %v1006_v61 }
 0x196   : > { %994 = vadd.xlane.f32.xlu0 %v993_v60  ;;  %v927_v9 = vrot.slane %v2307_v51, %v2177_v15  ;;  %v1031_v13 = vsel %vm980_vm10, %v903_v63, 0.0  ;;  %v1032_v7 = vsel %vm980_vm10, %v907_v3, 0.0  ;;  %v931_v17 = vrot.slane %v2307_v51, %v2163_v10 }
 0x197   : > { %v895_v18 = vrot.slane %v2304_v50, %v2177_v15  ;;  %v1021_v20 = vsel %vm980_vm10, %v887_v4, 0.0  ;;  %v1022_v21 = vsel %vm980_vm10, %v891_v5, 0.0  ;;  %v899_v22 = vrot.slane %v2304_v50, %v2163_v10 }
 0x198   : > { %v2339_v23 = vcombine.high %v2269_v32, %v2269_v32  ;;  %v2343_v24 = vcombine.high %v2241_v16, %v2241_v16  ;;  %v1033_v25 = vadd.f32 %v1032_v7, %v1031_v13  ;;  %v1023_v26 = vadd.f32 %v1022_v21, %v1021_v20 }
 0x199   : > { %1044 = vadd.xlane.f32.xlu1 %v1043_v6  ;;  %v1046_v27 = vsel %vm980_vm10, %v927_v9, 0.0  ;;  %v1047_v28 = vsel %vm980_vm10, %v931_v17, 0.0  ;;  %v2349_v29 = vcombine.high %v2304_v50, %v2304_v50  ;;  %v1026_v11 = vsel %vm980_vm10, %v895_v18, 0.0 }
 0x19a   : > { %1009 = vadd.xlane.f32.xlu0 %v1008_v8  ;;  %v1027_v12 = vsel %vm980_vm10, %v899_v22, 0.0  ;;  %v935_v33 = vrot.slane %v2339_v23, %v2177_v15  ;;  %v939_v34 = vrot.slane %v2339_v23, %v2163_v10  ;;  %v871_v35 = vrot.slane %v2343_v24, %v2177_v15 }
 0x19b   : > { %v875_v36 = vrot.slane %v2343_v24, %v2163_v10  ;;  %v2363_v37 = vcombine.high %v2263_v30, %v2263_v30  ;;  %v1048_v38 = vadd.f32 %v1047_v28, %v1046_v27  ;;  %v1028_v39 = vadd.f32 %v1027_v12, %v1026_v11 }
 0x19c   : > { %v911_v42 = vrot.slane %v2349_v29, %v2177_v15  ;;  %v1051_v0 = vsel %vm980_vm10, %v935_v33, 0.0  ;;  %v1052_v43 = vsel %vm980_vm10, %v939_v34, 0.0  ;;  %v915_v44 = vrot.slane %v2349_v29, %v2163_v10 }
 0x19d   : > { %1034 = vadd.xlane.f32.xlu1 %v1033_v25  ;;  %v2373_v46 = vcombine.high %v2307_v51, %v2307_v51  ;;  %v1011_v47 = vsel %vm980_vm10, %v871_v35, 0.0  ;;  %v1012_v48 = vsel %vm980_vm10, %v875_v36, 0.0  ;;  %v879_v49 = vrot.slane %v2363_v37, %v2177_v15 }
 0x19e   : > { %1024 = vadd.xlane.f32.xlu0 %v1023_v26  ;;  %v883_v52 = vrot.slane %v2363_v37, %v2163_v10  ;;  %v1053_v53 = vadd.f32 %v1052_v43, %v1051_v0  ;;  %v1036_v54 = vsel %vm980_vm10, %v911_v42, 0.0  ;;  %v1013_v55 = vadd.f32 %v1012_v48, %v1011_v47 }
 0x19f   : > { %v1037_v56 = vsel %vm980_vm10, %v915_v44, 0.0  ;;  %v943_v57 = vrot.slane %v2373_v46, %v2177_v15  ;;  %v947_v58 = vrot.slane %v2373_v46, %v2163_v10  ;;  %v1016_v60 = vsel %vm980_vm10, %v879_v49, 0.0  ;;  %v1078_v10 = vld [vmem:[%s2518_s4] sm:$0xff] }
 0x1a0   : > { %v1017_v61 = vsel %vm980_vm10, %v883_v52, 0.0  ;;  %v1038_v62 = vadd.f32 %v1037_v56, %v1036_v54  ;;  %1974 = vmatprep.mubr.msk.f32.mxu1 %vm419_vm0, %v1078_v10 }
 0x1a1   : > { %1049 = vadd.xlane.f32.xlu1 %v1048_v38  ;;  %v1018_v63 = vadd.f32 %v1017_v61, %v1016_v60  ;;  %v1056_v3 = vsel %vm980_vm10, %v943_v57, 0.0  ;;  %v1057_v4 = vsel %vm980_vm10, %v947_v58, 0.0 }
 0x1a2   : > { %1029 = vadd.xlane.f32.xlu0 %v1028_v39  ;;  %v1058_v5 = vadd.f32 %v1057_v4, %v1056_v3 }
 0x1a5   : > { %1054 = vadd.xlane.f32.xlu1 %v1053_v53 }
 0x1a6   : > { %1014 = vadd.xlane.f32.xlu0 %v1013_v55 }
 0x1a9   : > { %1039 = vadd.xlane.f32.xlu1 %v1038_v62 }
 0x1aa   : > { %1019 = vadd.xlane.f32.xlu0 %v1018_v63 }
 0x1ad   : > { %1059 = vadd.xlane.f32.xlu1 %v1058_v5 }
 0x21b   : > { %v985_v6 = vpop.xlane.xlu0 %984 }
 0x21c   : > { %v1062_v33 = vmul.f32 0.00390625, %v985_v6 }
 0x21d   : > { %v990_v8 = vpop.xlane.xlu1 %989 }
 0x21e   : > { %v1063_v21 = vmul.f32 0.00390625, %v990_v8 }
 0x21f   : > { %v1005_v9 = vpop.xlane.xlu0 %1004 }
 0x220   : > { %v1098_v27 = vrot.slane %v1063_v21, 7  ;;  %v1066_v42 = vmul.f32 0.00390625, %v1005_v9 }
 0x222   : > { %v1000_v13 = vpop.xlane.xlu1 %999  ;;  %v1100_v36 = vsel %vm1099_vm11, %v1098_v27, %v1062_v33  ;;  %v1107_v60 = vrot.slane %v1066_v42, 4 }
 0x223   : > { %v995_v7 = vpop.xlane.xlu0 %994  ;;  %v1065_v34 = vmul.f32 0.00390625, %v1000_v13 }
 0x224   : > { %v1064_v25 = vmul.f32 0.00390625, %v995_v7 }
 0x225   : > { %v1104_v44 = vrot.slane %v1065_v34, 5  ;;  %v1079_v34 = vld [vmem:[%s2518_s4 + $0x8] sm:$0xff] }
 0x226   : > { %v1045_v17 = vpop.xlane.xlu1 %1044  ;;  %v1101_v11 = vrot.slane %v1064_v25, 6 }
 0x227   : > { %v1010_v18 = vpop.xlane.xlu0 %1009  ;;  %v1074_v49 = vmul.f32 0.00390625, %v1045_v17 }
 0x228   : > { %v1103_v0 = vsel %vm1102_vm12, %v1101_v11, %v1100_v36  ;;  %v1067_v47 = vmul.f32 0.00390625, %v1010_v18  ;;  %v1081_v36 = vld [vmem:[%s2519_s5 + $0x8] sm:$0xff] }
 0x229   : > { %v1106_v54 = vsel %vm1105_vm13, %v1104_v44, %v1103_v0  ;;  %v1125_v5 = vrot.slane %v1074_v49, 4  ;;  %v1219_v49 = vld [vmem:[%s2520_s6 + $0x8] sm:$0xff] }
 0x22a   : > { %v1035_v20 = vpop.xlane.xlu1 %1034  ;;  %v1110_v3 = vrot.slane %v1067_v47, 3  ;;  %v1109_v10 = vsel %vm1108_vm14, %v1107_v60, %v1106_v54 }
 0x22b   : > { %v1025_v22 = vpop.xlane.xlu0 %1024  ;;  %v1072_v43 = vmul.f32 0.00390625, %v1035_v20 }
 0x22c   : > { %v1070_v48 = vmul.f32 0.00390625, %v1025_v22  ;;  %v1112_v22 = vsel %vm1111_vm15, %v1110_v3, %v1109_v10 }
 0x22d   : > { %v1121_v61 = vrot.slane %v1072_v43, 6 }
 0x22e   : > { %v1050_v26 = vpop.xlane.xlu1 %1049 }
 0x22f   : > { %v1030_v28 = vpop.xlane.xlu0 %1029  ;;  %v1075_v55 = vmul.f32 0.00390625, %v1050_v26 }
 0x230   : > { %v1071_v12 = vmul.f32 0.00390625, %v1030_v28 }
 0x231   : > { %v1127_v13 = vrot.slane %v1075_v55, 3 }
 0x232   : > { %v1055_v35 = vpop.xlane.xlu1 %1054  ;;  %v1119_v38 = vrot.slane %v1071_v12, 7 }
 0x233   : > { %v1015_v39 = vpop.xlane.xlu0 %1014  ;;  %v1076_v62 = vmul.f32 0.00390625, %v1055_v35  ;;  %v1218_v35 = vld [vmem:[%s2520_s6] sm:$0xff] }
 0x234   : > { %v1068_v52 = vmul.f32 0.00390625, %v1015_v39  ;;  %v1120_v56 = vsel %vm1099_vm11, %v1119_v38, %v1070_v48  ;;  %v1080_v38 = vld [vmem:[%s2519_s5] sm:$0xff] }
 0x235   : > { %v1122_v8 = vsel %vm1102_vm12, %v1121_v61, %v1120_v56  ;;  %v1129_v20 = vrot.slane %v1076_v62, 2 }
 0x236   : > { %v1040_v53 = vpop.xlane.xlu1 %1039  ;;  %v1113_v6 = vrot.slane %v1068_v52, 2  ;;  %v1221_v52 = vld [vmem:[%s2521_s7 + $0x8] sm:$0xff] }
 0x237   : > { %v1073_v57 = vmul.f32 0.00390625, %v1040_v53  ;;  %v1020_v58 = vpop.xlane.xlu0 %1019  ;;  %v1220_v53 = vld [vmem:[%s2521_s7] sm:$0xff] }
 0x238   : > { %v1069_v63 = vmul.f32 0.00390625, %v1020_v58  ;;  %v1115_v27 = vsel %vm1114_vm1, %v1113_v6, %v1112_v22 }
 0x239   : > { %v1123_v4 = vrot.slane %v1073_v57, 5 }
 0x23a   : > { %v1060_v9 = vpop.xlane.xlu1 %1059  ;;  %v1116_v17 = vrot.slane %v1069_v63, 1 }
 0x23b   : > { %v1124_v7 = vsel %vm1105_vm13, %v1123_v4, %v1122_v8  ;;  %v1077_v18 = vmul.f32 0.00390625, %v1060_v9 }
 0x23c   : > { %v1126_v21 = vsel %vm1108_vm14, %v1125_v5, %v1124_v7  ;;  %v1118_v11 = vsel %vm1117_vm2, %v1116_v17, %v1115_v27 }
 0x23d   : > { %v1131_v25 = vrot.slane %v1077_v18, 1  ;;  %v1128_v26 = vsel %vm1111_vm15, %v1127_v13, %v1126_v21 }
 0x23e   : > { %v1130_v28 = vsel %vm1114_vm1, %v1129_v20, %v1128_v26 }
 0x23f   : > { %v1132_v12 = vsel %vm1117_vm2, %v1131_v25, %v1130_v28 }
 0x240   : > { %v1992_v33 = vpack.c.bf16 %v1132_v12, %v1118_v11 }
 0x242   : > { %1993 = vmatprep.subr.bf16.mxu1 %v1992_v33 }
 0x243   : > { %1995 = vmatpush3.bf16.msra.mxu1 %v1992_v33 }
 0x246   : > { %1975 = vmatmul.mubr.msk.f32.vlgmr.msra.gmra.mrb[0].mxu1 %vm419_vm0, %v1079_v34 }
 0x247   : > { %1981 = vmatprep.mubr.msk.f32.mxu1 %vm419_vm0, %v1218_v35 }
 0x319   : > { %v1976_v39 = vpop.f32.mrb[0].mxu1 }
 0x31a   : > { %v1213_v42 = vadd.f32 %v1976_v39, %v1081_v36  ;;  %v1207_v0 = vpop.f32.mrb[1].mxu1 }
 0x31b   : > { %v1208_v43 = vadd.f32 %v1207_v0, %v1080_v38 }
 0x31c   : > { %v1217_v44 = vmax.f32 %v1213_v42, 0.0 }
 0x31d   : > { %v1216_v47 = vmax.f32 %v1208_v43, 0.0 }
 0x31f   : > { %v1996_v48 = vpack.c.bf16 %v1217_v44, %v1216_v47 }
 0x321   : > { %1997 = vmatprep.subr.bf16.mxu1 %v1996_v48 }
 0x322   : > { %1999 = vmatpush3.bf16.msra.mxu1 %v1996_v48  ;;  %v1560_v48 = vld [vmem:[%s2523_s9] sm:$0xff] }
 0x325   : > { %1982 = vmatmul.mubr.msk.f32.vlgmr.msra.gmra.mrb[2].mxu1 %vm419_vm0, %v1219_v49 }
 0x326   : > { %1785 = vmatprep.mubr.f32.mxu1 %v2049_v2 }
 0x3f8   : > { %v1983_v54 = vpop.f32.mrb[2].mxu1 }
 0x3f9   : > { %v1300_v55 = vadd.f32 %v1983_v54, %v1221_v52  ;;  %v1294_v56 = vpop.f32.mrb[3].mxu1 }
 0x3fa   : > { %v1295_v57 = vadd.f32 %v1294_v56, %v1220_v53 }
 0x3fb   : > { %v1304_v58 = vsub.f32 0.0, %v1300_v55 }
 0x3fc   : > { %v1303_v60 = vsub.f32 0.0, %v1295_v57 }
 0x3fd   : > { %v1307_v61 = vmul.f32 1.442695, %v1304_v58 }
 0x3fe   : > { %v1305_v62 = vmul.f32 1.442695, %v1303_v60 }
 0x3ff   : > { %2026 = vpow2.f32 %v1307_v61 }
 0x400   : > { %2028 = vpow2.f32 %v1305_v62 }
 0x409   : > { %v2027_v63 = vpop.eup %2026 }
 0x40a   : > { %v2029_v3 = vpop.eup %2028  ;;  %v1310_v4 = vadd.f32 1.0, %v2027_v63 }
 0x40b   : > { %v1309_v5 = vadd.f32 1.0, %v2029_v3 }
 0x40c   : > { %2030 = vrcp.f32 %v1310_v4 }
 0x40d   : > { %2032 = vrcp.f32 %v1309_v5 }
 0x416   : > { %v2031_v10 = vpop.eup %2030 }
 0x417   : > { %v2033_v6 = vpop.eup %2032  ;;  %v1373_v8 = vrot.slane %v2031_v10, %v2233_v59  ;;  %v1366_v7 = vcombine.high %v2031_v10, %v2031_v10 }
 0x418   : > { %v1324_v9 = vrot.slane %v2033_v6, %v2233_v59  ;;  %v1317_v11 = vcombine.high %v2033_v6, %v2033_v6 }
 0x419   : > { %v1389_v13 = vrot.slane %v1373_v8, %v2233_v59  ;;  %v1381_v18 = vcombine.high %v1373_v8, %v1373_v8  ;;  %v1380_v21 = vrot.slane %v1366_v7, %v2233_v59 }
 0x41a   : > { %v1340_v17 = vrot.slane %v1324_v9, %v2233_v59  ;;  %v1332_v26 = vcombine.high %v1324_v9, %v1324_v9  ;;  %v1331_v34 = vrot.slane %v1317_v11, %v2233_v59 }
 0x41b   : > { %1480 = vperm.xlu1 %2024, %v1389_v13   ;;  %v1411_v20 = vcombine.high %v1389_v13, %v1389_v13  ;;  %v1403_v22 = vrot.slane %v1381_v18, %v2233_v59  ;;  %v1396_v25 = vrot.slane %v1380_v21, %v2233_v59  ;;  %v1382_v28 = vcombine.high %v1380_v21, %v1380_v21 }
 0x41c   : > { %1416 = vperm.xlu0 %2023, %v1340_v17   ;;  %v1354_v12 = vrot.slane %v1332_v26, %v2233_v59  ;;  %v1362_v35 = vcombine.high %v1340_v17, %v1340_v17  ;;  %v1333_v38 = vcombine.high %v1331_v34, %v1331_v34  ;;  %v1347_v39 = vrot.slane %v1331_v34, %v2233_v59 }
 0x41d   : > { %v1413_v27 = vcombine.high %v1403_v22, %v1403_v22  ;;  %v1410_v33 = vrot.slane %v1382_v28, %v2233_v59  ;;  %v1412_v44 = vcombine.high %v1396_v25, %v1396_v25 }
 0x41e   : > { %v1364_v36 = vcombine.high %v1354_v12, %v1354_v12  ;;  %v1361_v42 = vrot.slane %v1333_v38, %v2233_v59  ;;  %v1363_v0 = vcombine.high %v1347_v39, %v1347_v39 }
 0x41f   : > { %1496 = vperm.xlu1 %2024, %v1411_v20   ;;  %v1414_v47 = vcombine.high %v1410_v33, %v1410_v33 }
 0x420   : > { %1488 = vperm.xlu0 %2023, %v1403_v22   ;;  %v1365_v43 = vcombine.high %v1361_v42, %v1361_v42 }
 0x423   : > { %1512 = vperm.xlu1 %2024, %v1396_v25  }
 0x424   : > { %1504 = vperm.xlu0 %2023, %v1413_v27  }
 0x427   : > { %1424 = vperm.xlu1 %2024, %v1354_v12  }
 0x428   : > { %1520 = vperm.xlu0 %2023, %v1410_v33  }
 0x42b   : > { %1432 = vperm.xlu1 %2024, %v1362_v35  }
 0x42c   : > { %1440 = vperm.xlu0 %2023, %v1364_v36  }
 0x42f   : > { %1448 = vperm.xlu1 %2024, %v1347_v39  }
 0x430   : > { %1456 = vperm.xlu0 %2023, %v1361_v42  }
 0x433   : > { %1464 = vperm.xlu1 %2024, %v1363_v0  }
 0x434   : > { %1472 = vperm.xlu0 %2023, %v1365_v43  }
 0x437   : > { %1528 = vperm.xlu1 %2024, %v1412_v44  }
 0x438   : > { %1536 = vperm.xlu0 %2023, %v1414_v47  }
 0x43b   : > { %1563 = vperm.xlu1 %2024, %v1560_v48  }
 0x49a   : > { %v1481_v49 = vpop.permute.xlu1 %1480 }
 0x49b   : > { %v1417_v52 = vpop.permute.xlu0 %1416  ;;  %v1486_v7 = vrot.slane %v1481_v49, %v2177_v15 }
 0x49c   : > { %v1422_v17 = vrot.slane %v1417_v52, %v2177_v15 }
 0x49e   : > { %v1497_v53 = vpop.permute.xlu1 %1496 }
 0x49f   : > { %v1489_v54 = vpop.permute.xlu0 %1488  ;;  %v1502_v5 = vrot.slane %v1497_v53, %v2177_v15 }
 0x4a0   : > { %v1494_v10 = vrot.slane %v1489_v54, %v2177_v15 }
 0x4a1   : > { %v1553_v28 = vmul.f32 %v1502_v5, %v2293_v45  ;;  %v1543_v45 = vmul.f32 %v1422_v17, %v2238_v14 }
 0x4a2   : > { %v1513_v55 = vpop.permute.xlu1 %1512  ;;  %v1552_v11 = vmul.f32 %v1494_v10, %v2304_v50 }
 0x4a3   : > { %v1505_v56 = vpop.permute.xlu0 %1504  ;;  %v1518_v12 = vrot.slane %v1513_v55, %v2177_v15 }
 0x4a4   : > { %v1510_v62 = vrot.slane %v1505_v56, %v2177_v15 }
 0x4a5   : > { %v1555_v0 = vmul.f32 %v1518_v12, %v2269_v32 }
 0x4a6   : > { %v1425_v57 = vpop.permute.xlu1 %1424  ;;  %v1554_v18 = vmul.f32 %v1510_v62, %v2349_v29 }
 0x4a7   : > { %v1521_v58 = vpop.permute.xlu0 %1520  ;;  %v1430_v9 = vrot.slane %v1425_v57, %v2177_v15 }
 0x4a8   : > { %v1526_v20 = vrot.slane %v1521_v58, %v2177_v15  ;;  %v1649_v35 = vcombine.low %v1553_v28, %v1554_v18 }
 0x4a9   : > { %v1544_v34 = vmul.f32 %v1430_v9, %v2244_v19 }
 0x4aa   : > { %v1433_v60 = vpop.permute.xlu1 %1432 }
 0x4ab   : > { %v1441_v61 = vpop.permute.xlu0 %1440  ;;  %v1438_v63 = vrot.slane %v1433_v60, %v2177_v15  ;;  %v1582_v44 = vcombine.low %v1543_v45, %v1544_v34 }
 0x4ac   : > { %v1446_v3 = vrot.slane %v1441_v61, %v2177_v15 }
 0x4ad   : > { %v1545_v21 = vmul.f32 %v1438_v63, %v2281_v41  ;;  %v1592_v53 = vrot.slane %v1582_v44, %v2233_v59 }
 0x4ae   : > { %v1449_v4 = vpop.permute.xlu1 %1448  ;;  %v1546_v22 = vmul.f32 %v1446_v3, %v2277_v40  ;;  %v1551_v40 = vmul.f32 %v1486_v7, %v2266_v31 }
 0x4af   : > { %v1454_v6 = vrot.slane %v1449_v4, %v2177_v15  ;;  %v1457_v8 = vpop.permute.xlu0 %1456 }
 0x4b0   : > { %v1462_v13 = vrot.slane %v1457_v8, %v2177_v15  ;;  %v1583_v36 = vcombine.low %v1545_v21, %v1546_v22  ;;  %v1648_v42 = vcombine.low %v1551_v40, %v1552_v11  ;;  %v1559_v22 = vld [vmem:[%s2522_s8] sm:$0xff] }
 0x4b1   : > { %v1547_v25 = vmul.f32 %v1454_v6, %v2241_v16  ;;  %v1556_v16 = vmul.f32 %v1526_v20, %v2307_v51  ;;  %v1665_v51 = vrot.slane %v1649_v35, %v2233_v59 }
 0x4b2   : > { %v1548_v26 = vmul.f32 %v1462_v13, %v2263_v30  ;;  %v1465_v27 = vpop.permute.xlu1 %1464  ;;  %v1599_v48 = vrot.slane %v1583_v36, %v2233_v59  ;;  %v1658_v52 = vrot.slane %v1648_v42, %v2233_v59 }
 0x4b3   : > { %v1470_v33 = vrot.slane %v1465_v27, %v2177_v15  ;;  %v1473_v29 = vpop.permute.xlu0 %1472 }
 0x4b4   : > { %v1478_v41 = vrot.slane %v1473_v29, %v2177_v15  ;;  %v1584_v50 = vcombine.low %v1547_v25, %v1548_v26  ;;  %v1680_v56 = vcombine.low %v1658_v52, %v1665_v51  ;;  %v1681_v57 = vcombine.high %v1658_v52, %v1665_v51  ;;  %v2034_v25 = vld [vmem:[%s2128_s22] sm:$0xff] }
 0x4b5   : > { %v1549_v30 = vmul.f32 %v1470_v33, %v2343_v24  ;;  %v1650_v24 = vcombine.low %v1555_v0, %v1556_v16  ;;  %v1615_v60 = vcombine.high %v1592_v53, %v1599_v48 }
 0x4b6   : > { %v1550_v38 = vmul.f32 %v1478_v41, %v2363_v37  ;;  %v1529_v39 = vpop.permute.xlu1 %1528  ;;  %v1606_v37 = vrot.slane %v1584_v50, %v2233_v59  ;;  %v1690_v4 = vrot.slane %v1680_v56, %v2233_v59  ;;  %v1697_v5 = vrot.slane %v1681_v57, %v2233_v59 }
 0x4b7   : > { %v1534_v19 = vrot.slane %v1529_v39, %v2177_v15  ;;  %v1537_v43 = vpop.permute.xlu0 %1536  ;;  %v1672_v58 = vrot.slane %v1650_v24, %v2233_v59  ;;  %v1631_v8 = vrot.slane %v1615_v60, %v2233_v59 }
 0x4b8   : > { %v1585_v31 = vcombine.low %v1549_v30, %v1550_v38  ;;  %v1542_v47 = vrot.slane %v1537_v43, %v2177_v15 }
 0x4b9   : > { %v1557_v14 = vmul.f32 %v1534_v19, %v2339_v23  ;;  %v1614_v23 = vcombine.low %v1592_v53, %v1599_v48 }
 0x4ba   : > { %v1613_v49 = vrot.slane %v1585_v31, %v2233_v59  ;;  %v1558_v32 = vmul.f32 %v1542_v47, %v2373_v46  ;;  %v1564_v26 = vpop.permute.xlu1 %1563 }
 0x4bb   : > { %v1624_v10 = vrot.slane %v1614_v23, %v2233_v59 }
 0x4bc   : > { %v1616_v54 = vcombine.low %v1606_v37, %v1613_v49  ;;  %v1617_v55 = vcombine.high %v1606_v37, %v1613_v49  ;;  %v1651_v15 = vcombine.low %v1557_v14, %v1558_v32 }
 0x4be   : > { %v1679_v61 = vrot.slane %v1651_v15, %v2233_v59  ;;  %v1638_v62 = vrot.slane %v1616_v54, %v2233_v59  ;;  %v1645_v46 = vrot.slane %v1617_v55, %v2233_v59 }
 0x4c0   : > { %v1682_v63 = vcombine.low %v1672_v58, %v1679_v61  ;;  %v1683_v3 = vcombine.high %v1672_v58, %v1679_v61  ;;  %v1647_v13 = vcombine.low %v1631_v8, %v1645_v46  ;;  %v1646_v17 = vcombine.low %v1624_v10, %v1638_v62 }
 0x4c2   : > { %v1704_v6 = vrot.slane %v1682_v63, %v2233_v59  ;;  %v1711_v9 = vrot.slane %v1683_v3, %v2233_v59  ;;  %v1796_v59 = vld [vmem:[%s2524_s10] sm:$0xff] }
 0x4c4   : > { %v1713_v7 = vcombine.low %v1697_v5, %v1711_v9  ;;  %v1712_v18 = vcombine.low %v1690_v4, %v1704_v6 }
 0x4c6   : > { %v2000_v20 = vpack.c.bf16 %v1713_v7, %v1647_v13  ;;  %v2002_v21 = vpack.c.bf16 %v1712_v18, %v1646_v17 }
 0x4c8   : > { %2001 = vmatprep.subr.bf16.mxu1 %v2000_v20 }
 0x4c9   : > { %2003 = vmatpush1.bf16.msra.mxu1 %v2002_v21 }
 0x4ca   : > { %1955 = vmatprep.subr.msk.mxu1 %vm579_vm4, %v2137_v1 }
 0x4cc   : > { %1954 = vmatmul.mubr.msk.f32.vlgmr.msra.gmra.mrb[4].mxu1 %vm419_vm0, %v1559_v22 }
 0x4cd   : > { %1956 = vmatpush1.msk.msra.mxu1 %vm579_vm4, %v2034_v25  ;;  %1869 = vmatprep.mubr.f32.mxu1 %v2049_v2 }
 0x4d0   : > { %1957 = vmatmul.mubr.msk.f32.vlgmr.msra.gmra.mrb[6].mxu1 %vm1797_vm3, %v1796_v59 }
 0x59f   : > { %v1787_v27 = vpop.f32.mrb[4].mxu1 }
 0x5a0   : > { %v1788_v28 = vadd.f32 %v1787_v27, %v1564_v26  ;;  %v1789_v11 = vpop.f32.mrb[5].mxu1 }
 0x5a1   : > { %v1790_v12 = vadd.f32 %v1789_v11, %v1564_v26 }
 0x5a2   : > { %v1792_v33 = vmax.f32 %v1788_v28, 0.0 }
 0x5a3   : > { %v1793_v1 = vmax.f32 %v1790_v12, 0.0  ;;  %v1871_v29 = vpop.f32.mrb[6].mxu1 }
 0x5a4   : > { %v1794_v34 = vmin.f32 %v1792_v33, 6.0  ;;  %v1873_v41 = vpop.f32.mrb[7].mxu1 }
 0x5a5   : > { %v1795_v40 = vmin.f32 %v1793_v1, 6.0 }
 0x5a6   : > { %v1876_v2 = vadd.f32 %v1871_v29, %v1794_v34 }
 0x5a7   : > { %v1877_v35 = vadd.f32 %v1873_v41, %v1795_v40 }
 0x5a8   : > { %1878 = vst [vmem:[%s386_s23] sm:$0xff] %v1876_v2 }
 0x5a9   : > { %1879 = vst [vmem:[%s386_s23 + $0x8] sm:$0xff] %v1877_v35 }
 0x5aa PF: > { %s21_s17 = sadd.s32 1, %s2041_s17  }
 0x5ab   : > { %p18_p4 = scmp.ge.s32.totalorder %s21_s17, 4  }
 0x5ad   :  { %20 = sbr.rel (!%p18_p4) target bundleno = 1 (0x1), region = 94 }

</bundles_post_ra>
